<compile_context>
chip_gen: v7x
topology: tpu7x:2x2x1
jax: 0.10.0
libtpu: 0.0.40
codegen_flags: <defaults>
</compile_context>

<pallas_src>
import jax
import jax.numpy as jnp
from jax.experimental import pallas as pl
from jax.experimental.pallas import tpu as pltpu


def _round_up(x, m):
    return ((x + m - 1) // m) * m


def _patch_embed_kernel(x_ref, w_ref, b_ref, o_ref):
    # x_ref: (tm, K) input dtype; w_ref: (K, E) compute dtype;
    # b_ref: (1, E) f32; o_ref: (tm, E) f32.
    x = x_ref[...].astype(w_ref.dtype)  # in-kernel cast (no-op on the f32 path)
    acc = jnp.dot(x, w_ref[...], preferred_element_type=jnp.float32)
    # Epilogue in f32 (bias add + cast) — safe on all generations incl. v5e.
    o_ref[...] = (acc + b_ref[...]).astype(o_ref.dtype)


def prepare_patch_embed_params(weight, bias, *, compute_dtype=jnp.bfloat16):
    """One-time (init-time) parameter prep.

    weight: (E, K) PyTorch nn.Linear layout; bias: (E,).
    Returns (w (K, E) compute_dtype, bias (1, E) float32).  Transposing here —
    once, at init — means the kernel runs a canonical (M,K)x(K,E) MXU matmul
    with zero per-call transpose cost.
    """
    E, K = weight.shape
    w = jnp.asarray(weight).T.astype(compute_dtype)           # (K, E)
    b = jnp.asarray(bias).reshape(1, E).astype(jnp.float32)   # (1, E)
    return w, b


def patch_embed_forward(x, w_prepared, b_prepared, *, flatten_embedding=True,
                        tm_max=256):
    """x: (B, T, N, C); w_prepared/b_prepared from prepare_patch_embed_params."""
    B, T, N, C = x.shape
    K, E = w_prepared.shape
    assert K == N * C, "weight in_features must equal num_points * in_chans"
    M = B * T

    # view(B*T, N*C): free row-major reshape.
    x2d = x.reshape(M, K)

    # Row tiling: tm a multiple of 8; pad rows only if the grid doesn't divide
    # evenly (not the case at the module's shapes, where M = B*T = 16).
    tm = min(tm_max, _round_up(M, 8))
    Mp = _round_up(M, tm)
    if Mp != M:
        x2d = jnp.pad(x2d, ((0, Mp - M), (0, 0)))
    grid_m = Mp // tm

    x_itemsize = jnp.dtype(x2d.dtype).itemsize
    w_itemsize = jnp.dtype(w_prepared.dtype).itemsize
    cost = pl.CostEstimate(
        flops=2 * Mp * K * E,
        transcendentals=0,
        bytes_accessed=(Mp * K * x_itemsize      # X
                        + K * E * w_itemsize     # W
                        + Mp * E * 4             # out
                        + E * 4),                # bias
    )

    out = pl.pallas_call(
        _patch_embed_kernel,
        out_shape=jax.ShapeDtypeStruct((Mp, E), jnp.float32),
        grid=(grid_m,),
        in_specs=[
            # Block last dims equal the full (ragged) K / E extents, which the
            # TPU BlockSpec rules allow; E=128 keeps the output lane-dense.
            pl.BlockSpec((tm, K), lambda i: (i, 0)),   # X: rows blocked
            pl.BlockSpec((K, E), lambda i: (0, 0)),    # W: VMEM-resident
            pl.BlockSpec((1, E), lambda i: (0, 0)),    # bias: VMEM-resident
        ],
        out_specs=pl.BlockSpec((tm, E), lambda i: (i, 0)),   # lane-dense output
        compiler_params=pltpu.CompilerParams(
            dimension_semantics=("parallel",),          # megacore sharding on v7x
        ),
        cost_estimate=cost,
    )(x2d, w_prepared, b_prepared)

    if Mp != M:
        out = out[:M]
    if not flatten_embedding:
        # Matches PyTorch x.view(B, T, -1, embed_dim) -> (B, T, 1, E).
        out = out.reshape(B, T, -1, E)
    return out


if __name__ == "__main__":
    # Module-implied small shapes: num_points N=21, in_chans C=2,
    # embed_dim E=128, batch B=2, sequence T=8.
    B, T, N, C = 2, 8, 21, 2
    E = 128
    K = N * C

    key = jax.random.PRNGKey(0)
    kx, kw, kb = jax.random.split(key, 3)

    x = jax.random.normal(kx, (B, T, N, C), dtype=jnp.float32)
    # Synthetic nn.Linear(in_chans*num_points, embed_dim) parameters.
    weight = jax.random.normal(kw, (E, K), dtype=jnp.float32) * 0.02
    bias = jax.random.normal(kb, (E,), dtype=jnp.float32) * 0.02

    # Full-precision reference of the PyTorch forward.
    ref = x.reshape(B * T, K) @ weight.T + bias

    # 1) bf16-weight / in-kernel-cast / f32-accumulate path (perf default).
    w_bf16, b_f32 = prepare_patch_embed_params(weight, bias,
                                               compute_dtype=jnp.bfloat16)
    y_bf16 = jax.block_until_ready(patch_embed_forward(x, w_bf16, b_f32))
    assert y_bf16.shape == (B * T, E)
    assert jnp.allclose(y_bf16, ref, atol=3e-2, rtol=3e-2)

    # 2) f32 path for strict numerical parity with the original module.
    w_f32, _ = prepare_patch_embed_params(weight, bias,
                                          compute_dtype=jnp.float32)
    y_f32 = jax.block_until_ready(patch_embed_forward(x, w_f32, b_f32))
    assert y_f32.shape == (B * T, E)
    assert jnp.allclose(y_f32, ref, atol=1e-4, rtol=1e-4)

    # Non-flattened variant shape check: (B, T, 1, E) like x.view(B, T, -1, E).
    y_nf = jax.block_until_ready(
        patch_embed_forward(x, w_bf16, b_f32, flatten_embedding=False))
    assert y_nf.shape == (B, T, 1, E)

    print("KERNEL_OK")
</pallas_src>

<mosaic_0001>
module attributes {stable_mosaic.version = 11 : i64} {
  func.func @_patch_embed_kernel(%arg0: i32, %arg1: memref<16x42xf32, #tpu.memory_space<vmem>>, %arg2: memref<42x128xbf16, #tpu.memory_space<vmem>>, %arg3: memref<1x128xf32, #tpu.memory_space<vmem>>, %arg4: memref<16x128xf32, #tpu.memory_space<vmem>>) attributes {dimension_semantics = [#tpu.dimension_semantics<parallel>], iteration_bounds = array<i64: 1>, scalar_prefetch = 0 : i64, scratch_operands = 0 : i64, tpu.core_type = #tpu.core_type<tc>, window_params = [{transform_indices = @transform_0, window_bounds = array<i64: 16, 42>}, {pipeline_mode = #tpu.pipeline_mode<synchronous>, transform_indices = @transform_1, window_bounds = array<i64: 42, 128>}, {pipeline_mode = #tpu.pipeline_mode<synchronous>, transform_indices = @transform_2, window_bounds = array<i64: 1, 128>}, {transform_indices = @transform_3, window_bounds = array<i64: 16, 128>}]} {
    %c0 = arith.constant 0 : index
    %c0_0 = arith.constant 0 : index
    %0 = vector.load %arg1[%c0, %c0_0] : memref<16x42xf32, #tpu.memory_space<vmem>>, vector<16x42xf32>
    %1 = arith.truncf %0 : vector<16x42xf32> to vector<16x42xbf16>
    %c0_1 = arith.constant 0 : index
    %c0_2 = arith.constant 0 : index
    %2 = vector.load %arg2[%c0_1, %c0_2] : memref<42x128xbf16, #tpu.memory_space<vmem>>, vector<42x128xbf16>
    %cst = arith.constant dense<0.000000e+00> : vector<16x128xf32>
    %3 = tpu.matmul %1, %2, %cst {dimension_numbers = #tpu.dot_dimension_numbers<[1], [0], [0], [1], [0, 0, 1, 1], [], []>} : vector<16x42xbf16>, vector<42x128xbf16>, vector<16x128xf32> -> vector<16x128xf32>
    %c0_3 = arith.constant 0 : index
    %c0_4 = arith.constant 0 : index
    %4 = vector.load %arg3[%c0_3, %c0_4] : memref<1x128xf32, #tpu.memory_space<vmem>>, vector<1x128xf32>
    %5 = vector.broadcast %4 : vector<1x128xf32> to vector<16x128xf32>
    %6 = arith.addf %3, %5 : vector<16x128xf32>
    %c0_5 = arith.constant 0 : index
    %c0_6 = arith.constant 0 : index
    %7 = vector.load %arg4[%c0_5, %c0_6] : memref<16x128xf32, #tpu.memory_space<vmem>>, vector<16x128xf32>
    tpu.vector_store %arg4[%c0_5, %c0_6], %6 {strides = array<i32>} : memref<16x128xf32, #tpu.memory_space<vmem>>, vector<16x128xf32>,
    return
  }
  func.func @transform_0(%arg0: i32) -> (i32, i32) {
    %c0_i32 = arith.constant 0 : i32
    %c0_i32_0 = arith.constant 0 : i32
    return %arg0, %c0_i32 : i32, i32
  }
  func.func @transform_1(%arg0: i32) -> (i32, i32) {
    %c0_i32 = arith.constant 0 : i32
    %c0_i32_0 = arith.constant 0 : i32
    %c0_i32_1 = arith.constant 0 : i32
    return %c0_i32, %c0_i32_0 : i32, i32
  }
  func.func @transform_2(%arg0: i32) -> (i32, i32) {
    %c0_i32 = arith.constant 0 : i32
    %c0_i32_0 = arith.constant 0 : i32
    %c0_i32_1 = arith.constant 0 : i32
    return %c0_i32, %c0_i32_0 : i32, i32
  }
  func.func @transform_3(%arg0: i32) -> (i32, i32) {
    %c0_i32 = arith.constant 0 : i32
    %c0_i32_0 = arith.constant 0 : i32
    return %arg0, %c0_i32 : i32, i32
  }
}

</mosaic_0001>

<bundles_post_ra>
// kernel: tpu_custom_call.1
= control target key start
LH: loop header
LB: loop body
LE: loop exit
PB: predicated region body
PF: predicated region fallthrough
CT: control target
= control target key end

     0   :  { %8 = vsyncpa [#allocation3], 0  ;;  %s323_s0 = inlined_call_operand.hbm [shape: f32[16,42], index: 0, kind: input, shape index: {}]   ;;  %s324_s1 = inlined_call_operand.hbm [shape: bf16[42,128], index: 1, kind: input, shape index: {}]   ;;  %s325_s2 = inlined_call_operand.vmem [shape: f32[1,128], index: 2, kind: input, shape index: {}]   ;;  %s326_s3 = inlined_call_operand.hbm [shape: f32[16,128], index: 3, kind: output, shape index: {}]  }
   0x1   :  { %9 = vsyncpa [#allocation6], 0 }
   0x2   :  { %10 = vsyncpa [#allocation4], 0  ;;  %s249_s12 = smov [#allocation2]   ;;  %s177_s16 = scalar_lea.hbm %s323_s0, 256 }
   0x3   :  { %s16_s13 = sshll.u32 %s249_s12, 4  ;;  %p178_p0 = scmp.ne.s32.totalorder %s323_s0, %s177_s16  ;;  %s17_s13 = int_to_ptr.vmem [resolvable:$true] %s16_s13 }
   0x4   :  { %p181_p1 = scmp.lt.u32.totalorder %s177_s16, %s323_s0 }
   0x6   :  { %p183_p2 = pnand %p181_p1, %p178_p0 }
   0x8   :  { %186 = shalt.err (!%p183_p2)
}
   0x9   :  { %s187_s21 = scalar_lea.vmem %s17_s13, 256  ;;  %p192_p4 = scmp.lt.s32.totalorder %s17_s13, %s17_s13 }
   0xa   :  { %p188_p3 = scmp.ne.s32.totalorder %s17_s13, %s187_s21  ;;  %p193_p5 = scmp.lt.s32.totalorder %s187_s21, %s187_s21 }
   0xc   :  { %p194_p6 = por %p193_p5, %p192_p4 }
   0xe   :  { %p195_p7 = pnand %p194_p6, %p188_p3 }
  0x10   :  { %198 = shalt.err (!%p195_p7)
}
  0x11   :  { %s250_s22 = smov 128   ;;  %s251_s23 = smov 8  }
  0x12   :  { %22 = dma.hbm_to_vmem [thread:$0]  %s323_s0, 256, %s17_s13, [#allocation3], %s250_s22, %s250_s22, %s251_s23  }
  0x13   :  { %s252_s26 = smov [#allocation5]   ;;  %s199_s30 = scalar_lea.hbm %s324_s1, 384 }
  0x14   :  { %s28_s27 = sshll.u32 %s252_s26, 4  ;;  %p200_p8 = scmp.ne.s32.totalorder %s324_s1, %s199_s30  ;;  %s29_s27 = int_to_ptr.vmem [resolvable:$true] %s28_s27 }
  0x15   :  { %p203_p9 = scmp.lt.u32.totalorder %s199_s30, %s324_s1 }
  0x17   :  { %p205_p10 = pnand %p203_p9, %p200_p8 }
  0x19   :  { %208 = shalt.err (!%p205_p10)
}
  0x1a   :  { %s209_s8 = scalar_lea.vmem %s29_s27, 384  ;;  %p214_p12 = scmp.lt.s32.totalorder %s29_s27, %s29_s27 }
  0x1b   :  { %p210_p11 = scmp.ne.s32.totalorder %s29_s27, %s209_s8  ;;  %p215_p13 = scmp.lt.s32.totalorder %s209_s8, %s209_s8 }
  0x1d   :  { %p216_p0 = por %p215_p13, %p214_p12 }
  0x1f   :  { %p217_p1 = pnand %p216_p0, %p210_p11 }
  0x21   :  { %220 = shalt.err (!%p217_p1)
}
  0x22   :  { %s253_s0 = smov 64   ;;  %s254_s9 = smov 4  }
  0x23   :  { %34 = dma.hbm_to_vmem [thread:$0]  %s324_s1, 384, %s29_s27, [#allocation6], %s253_s0, %s253_s0, %s254_s9  }
  0x24   :  { %243 = dma.done.wait [#allocation3], 256  }
  0x25   :  { %244 = vsyncadd [#allocation3], 4294967040 }
  0x26   :  { %245 = dma.done.wait [#allocation6], 384  }
  0x27   :  { %246 = vsyncadd [#allocation6], 4294966912  ;;  %v255_v0 = vmov 0.0   ;;  %vm256_vm0 = vmmov 0   ;;  %v174_v1 = vld [vmem:[#allocation5] sm:$0xff]   ;;  %v175_v2 = vld [vmem:[#allocation5 + $0x8] sm:$0xff]  }
  0x28   :  { %155 = vmatprep.subr.bf16.mxu0 %v255_v0  ;;  %161 = vmatprep.mubr.msk.bf16.mxu0 %vm256_vm0, %v255_v0  ;;  %v176_v3 = vld [vmem:[#allocation5 + $0x10] sm:$0x1f]   ;;  %vm81_vm1 = vcmask 1044480   ;;  %v45_v5 = vld [vmem:[#allocation2 + $0x8] sm:$0xff]  ;;  %vm77_vm2 = vcmask 343040   ;;  %s257_s13 = smov [#allocation7]  }
  0x29   :  { %156 = vmatpush3.bf16.msra.mxu0 %v174_v1  ;;  %v44_v4 = vld [vmem:[#allocation2] sm:$0xff]  ;;  %v83_v6 = vsel %vm81_vm1, %v176_v3, 0  ;;  %s133_s14 = sshll.u32 %s257_s13, 4  ;;  %s134_s14 = int_to_ptr.vmem [resolvable:$true] %s133_s14 }
  0x2a   :  { %157 = vmatprep.subr.bf16.mxu0 %v255_v0  ;;  %v46_v7 = vpack.c.bf16 %v45_v5, %v44_v4  ;;  %v146_v8 = vld [vmem:[%s325_s2] ss:$0 sm:$0xff]  ;;  %s221_s15 = scalar_lea.vmem %s134_s14, 256  ;;  %p226_p3 = scmp.lt.s32.totalorder %s134_s14, %s134_s14 }
  0x2b   :  { %p222_p2 = scmp.ne.s32.totalorder %s134_s14, %s221_s15  ;;  %p227_p4 = scmp.lt.s32.totalorder %s221_s15, %s221_s15 }
  0x2d   :  { %158 = vmatpush3.bf16.msra.mxu0 %v175_v2  ;;  %p228_p5 = por %p227_p4, %p226_p3 }
  0x2e   :  { %159 = vmatprep.subr.bf16.mxu0 %v255_v0 }
  0x2f   :  { %p229_p6 = pnand %p228_p5, %p222_p2 }
  0x31   :  { %160 = vmatpush3.bf16.msra.mxu0 %v83_v6 }
  0x34   :  { %162 = vmatmul.mubr.msk.bf16.vlgmr.msra.gmra.mrb[0].mxu0 %vm77_vm2, %v46_v7 }
 0x107   :  { %v119_v9 = vpop.f32.mrb[0].mxu0 }
 0x108   :  { %v120_v10 = vadd.f32 %v146_v8, %v119_v9  ;;  %v163_v11 = vpop.f32.mrb[1].mxu0 }
 0x109   :  { %v122_v12 = vpop.f32.mrb[2].mxu0 }
 0x10a   :  { %126 = vst [vmem:[#allocation7] sm:$0xff] %v120_v10  ;;  %v123_v13 = vadd.f32 %v146_v8, %v122_v12  ;;  %v164_v14 = vpop.f32.mrb[3].mxu0 }
 0x10c   :  { %127 = vst [vmem:[#allocation7 + $0x8] sm:$0xff] %v123_v13 }
 0x10d   :  { %232 = shalt.err (!%p229_p6)
}
 0x10e   :  { %s233_s17 = scalar_lea.hbm %s326_s3, 256 }
 0x10f   :  { %p234_p7 = scmp.ne.s32.totalorder %s326_s3, %s233_s17  ;;  %p237_p8 = scmp.lt.u32.totalorder %s233_s17, %s326_s3 }
 0x111   :  { %p239_p9 = pnand %p237_p8, %p234_p7 }
 0x113   :  { %242 = shalt.err (!%p239_p9)
}
 0x114   :  { %139 = dma.vmem_to_hbm [thread:$0]  %s134_s14, 256, %s326_s3, [#allocation4], %s250_s22, %s250_s22, %s251_s23  }
 0x115   :  { %247 = dma.done.wait [#allocation4], 256  }
 0x116   :  { %248 = vsyncadd [#allocation4], 4294967040 }
 0x117   :  { %143 = vsyncpa [#allocation3], 1 }
 0x118   :  { %144 = vsyncpa [#allocation6], 1 }
 0x119   :  { %145 = vsyncpa [#allocation4], 1 }

</bundles_post_ra>
